<compile_context>
chip_gen: v6e
topology: v6e:2x2x1
jax: 0.10.0
libtpu: 0.0.40
codegen_flags: <defaults>
</compile_context>

<pallas_src>
import functools

import jax
import jax.numpy as jnp
from jax import lax
from jax.experimental import pallas as pl
from jax.experimental.pallas import tpu as pltpu

K = 7            # conv kernel size
PAD = K // 2     # "same" padding = 3


def _spatial_attention_kernel(x_ref, band_ref, shift_ref, o_ref,
                              sum_ref, max_ref, *, C, ragged):
    # x_ref     : (1, c_tile, H, W) VMEM  -- channel tile of the input (native dtype)
    # band_ref  : (2, K, W, W)      VMEM  -- banded column matrices [avg|max] (1/C folded into avg)
    # shift_ref : (K, H, H)         VMEM  -- 0/1 row-shift ("same"-pad) matrices
    # o_ref     : (1, 1, H, W)      VMEM  -- output map
    # sum_ref, max_ref : (H, W) f32 VMEM scratch carried across the channel grid axis
    c_idx = pl.program_id(1)
    n_c = pl.num_programs(1)

    x = x_ref[0]                                               # (c_tile, H, W)
    if ragged:
        # Last channel tile may extend past C: mask the tail channels.
        c_tile = x_ref.shape[1]
        ch = lax.broadcasted_iota(jnp.int32, x.shape, 0)
        valid = ch < (C - c_idx * c_tile)
        xf = jnp.where(valid, x.astype(jnp.float32), 0.0)
        part_sum = jnp.sum(xf, axis=0)                         # (H, W)
        part_max = jnp.max(jnp.where(valid, x.astype(jnp.float32), -jnp.inf), axis=0)
    else:
        # Reduction over the *leading* axis: full-vreg VPU adds / maxes, no XLU.
        part_sum = jnp.sum(x.astype(jnp.float32), axis=0)      # (H, W)
        part_max = jnp.max(x, axis=0).astype(jnp.float32)      # max in native dtype (exact)

    @pl.when(c_idx == 0)
    def _init():
        sum_ref[...] = part_sum
        max_ref[...] = part_max

    @pl.when(c_idx > 0)
    def _accum():
        sum_ref[...] = sum_ref[...] + part_sum
        max_ref[...] = jnp.maximum(max_ref[...], part_max)

    # ---- last channel step: 7x7 "same" conv over [avg, max] + sigmoid -------
    @pl.when(c_idx == n_c - 1)
    def _finalize():
        s = sum_ref[...]       # channel sum; the 1/C of the mean is folded into band_ref[0]
        m = max_ref[...]       # channel max

        def tap(ky):
            # column (dx) direction: banded (W, W) matmuls on the MXU
            b = jnp.dot(s, band_ref[0, ky], preferred_element_type=jnp.float32)
            b = b + jnp.dot(m, band_ref[1, ky], preferred_element_type=jnp.float32)
            # row (dy) direction: 0/1 row-shift matrix (zero fill at the borders)
            return jnp.dot(shift_ref[ky], b, preferred_element_type=jnp.float32)

        acc = tap(0)
        for ky in range(1, K):
            acc = acc + tap(ky)

        # sigmoid(x) == 0.5 * (1 + tanh(x / 2)): transcendental on the EUP,
        # no divide / reciprocal on the VALU.
        o_ref[0, 0] = 0.5 * jnp.tanh(0.5 * acc) + 0.5


def _conv_matrices(w, C, H, W):
    """Turn the 7x7 zero-padded conv into plain matmuls.

    Returns band (2, K, W, W) with band[i, ky, j, c] = w[i, ky, (j - c) + PAD]
    on the valid band (|j - c| <= PAD) and 0 elsewhere (1/C folded into the avg
    channel), plus shift (K, H, H) with shift[ky, r, s] = 1 iff s == r + (ky - PAD).
    """
    w = w.astype(jnp.float32)
    j = jnp.arange(W)[:, None]                  # source column
    c = jnp.arange(W)[None, :]                  # output column
    d = j - c                                   # = dx (valid taps: |dx| <= PAD)
    band = jnp.zeros((2, K, W, W), jnp.float32)
    for kx in range(K):
        dx = kx - PAD
        band = band + jnp.where(d == dx, 1.0, 0.0)[None, None] * w[:, :, kx, None, None]
    band = band * jnp.array([1.0 / C, 1.0], jnp.float32)[:, None, None, None]

    rr = jnp.arange(H)[None, :, None]           # output row
    ss = jnp.arange(H)[None, None, :]           # source row
    dy = (jnp.arange(K) - PAD)[:, None, None]
    shift = (ss == rr + dy).astype(jnp.float32)           # (K, H, H)
    return band, shift


def _round_up(v, m):
    return ((v + m - 1) // m) * m


def _padded_block_bytes(shape, itemsize):
    """VMEM footprint of one block, accounting for (sublane, lane) tile padding."""
    lead = 1
    for dim in shape[:-2]:
        lead *= dim
    sublanes = 8 * max(1, 4 // itemsize)        # 8 for f32, 16 for bf16, 32 for int8
    return lead * _round_up(shape[-2], sublanes) * _round_up(shape[-1], 128) * itemsize


def _vmem_capacity_bytes():
    try:
        return int(pltpu.get_tpu_info().vmem_capacity_bytes)
    except Exception:
        return 64 * 1024 * 1024                 # conservative fallback (v7x per-TC)


def _pick_c_tile(C, per_channel_bytes, budget_bytes):
    """Largest channel tile whose single input block stays under budget_bytes.
    Prefers an exact divisor of C; otherwise tiles raggedly (kernel masks)."""
    max_ch = int(max(1, budget_bytes // max(1, per_channel_bytes)))
    if C <= max_ch:
        return C, False
    div = 1
    for t in range(max_ch, 0, -1):
        if C % t == 0:
            div = t
            break
    if 2 * div >= max_ch:                       # good-enough exact divisor
        return div, False
    return max_ch, True                         # ragged last tile, masked in-kernel


def spatial_attention(x, w):
    """x: (N, C, H, W) f32/bf16;  w: (2, K, K) f32  ->  (N, 1, H, W) f32."""
    N, C, H, W = x.shape
    band, shift = _conv_matrices(w, C, H, W)

    # ---- VMEM-aware tiling (dtype- and generation-aware) ---------------------
    cap = _vmem_capacity_bytes()
    per_channel = _padded_block_bytes((1, H, W), x.dtype.itemsize)
    fixed = (2 * (_padded_block_bytes(band.shape, 4)
                  + _padded_block_bytes(shift.shape, 4)
                  + _padded_block_bytes((1, 1, H, W), 4))
             + 2 * _padded_block_bytes((H, W), 4)
             + (6 << 20))                       # headroom for epilogue temps / spills
    budget = max(1 << 20, min(8 << 20, (int(cap * 0.85) - fixed) // 2))
    c_tile, ragged = _pick_c_tile(C, per_channel, budget)
    n_c = pl.cdiv(C, c_tile)
    needed = fixed + 2 * per_channel * c_tile   # x block is double-buffered
    vmem_limit = int(min(cap * 0.9, max(needed, 32 << 20)))

    # TODO(synk): for N=1 inference on v7x (2 TensorCores), add a "parallel"
    # spatial grid axis over row bands (with a 3-row halo on the avg/max maps)
    # so the second core is not idle; with N>=2 the batch axis feeds both cores.
    # TODO(synk): for very wide maps (W >= ~512) the (W, W) band matrices should
    # be column-tiled instead of held whole (double-buffered) in VMEM.
    grid = (N, n_c)

    kernel = functools.partial(_spatial_attention_kernel, C=C, ragged=ragged)
    out = pl.pallas_call(
        kernel,
        out_shape=jax.ShapeDtypeStruct((N, 1, H, W), jnp.float32),
        grid=grid,
        in_specs=[
            pl.BlockSpec((1, c_tile, H, W), lambda n, c: (n, c, 0, 0)),
            pl.BlockSpec((2, K, W, W), lambda n, c: (0, 0, 0, 0)),    # constant block:
            pl.BlockSpec((K, H, H), lambda n, c: (0, 0, 0)),          # fetched once, reused
        ],
        out_specs=pl.BlockSpec((1, 1, H, W), lambda n, c: (n, 0, 0, 0)),
        scratch_shapes=[
            pltpu.VMEM((H, W), jnp.float32),    # running channel sum
            pltpu.VMEM((H, W), jnp.float32),    # running channel max
        ],
        compiler_params=pltpu.CompilerParams(
            dimension_semantics=("parallel", "arbitrary"),
            vmem_limit_bytes=vmem_limit,
        ),
    )(x, band, shift)
    return out


def spatial_attention_ref(x, w):
    """Pure-JAX reference (mirrors the PyTorch forward)."""
    xf = x.astype(jnp.float32)
    avg_out = jnp.mean(xf, axis=1, keepdims=True)
    max_out = jnp.max(xf, axis=1, keepdims=True)
    cat = jnp.concatenate([avg_out, max_out], axis=1)         # (N, 2, H, W)
    kernel = w.astype(jnp.float32)[jnp.newaxis]               # (1, 2, K, K) OIHW
    y = lax.conv_general_dilated(
        cat, kernel, window_strides=(1, 1), padding=[(PAD, PAD), (PAD, PAD)],
        dimension_numbers=("NCHW", "OIHW", "NCHW"))
    return jax.nn.sigmoid(y)


if __name__ == "__main__":
    key = jax.random.PRNGKey(0)
    kx, kw = jax.random.split(key)

    N, C, H, W = 2, 4, 16, 16
    x = jax.random.normal(kx, (N, C, H, W), dtype=jnp.float32)
    # nn.Conv2d(2, 1, 7, bias=False) weight (1, 2, 7, 7) with out-channel squeezed.
    w = jax.random.normal(kw, (2, K, K), dtype=jnp.float32) * 0.1

    out = jax.block_until_ready(spatial_attention(x, w))
    ref = spatial_attention_ref(x, w)

    assert out.shape == (N, 1, H, W)
    # Tolerance covers the MXU f32 matmul passes in the conv epilogue.
    assert jnp.allclose(out, ref, atol=5e-3), "mismatch vs reference"

    print("KERNEL_OK")
</pallas_src>

<mosaic_0001>
module attributes {stable_mosaic.version = 11 : i64} {
  func.func @_spatial_attention_kernel(%arg0: i32, %arg1: i32, %arg2: memref<1x4x16x16xf32, #tpu.memory_space<vmem>>, %arg3: memref<2x7x16x16xf32, #tpu.memory_space<vmem>>, %arg4: memref<7x16x16xf32, #tpu.memory_space<vmem>>, %arg5: memref<1x1x16x16xf32, #tpu.memory_space<vmem>>, %arg6: memref<16x16xf32, #tpu.memory_space<vmem>>, %arg7: memref<16x16xf32, #tpu.memory_space<vmem>>) attributes {dimension_semantics = [#tpu.dimension_semantics<parallel>, #tpu.dimension_semantics<arbitrary>], iteration_bounds = array<i64: 2, 1>, scalar_prefetch = 0 : i64, scratch_operands = 2 : i64, tpu.core_type = #tpu.core_type<tc>, window_params = [{transform_indices = @transform_0, window_bounds = array<i64: 1, 4, 16, 16>}, {pipeline_mode = #tpu.pipeline_mode<synchronous>, transform_indices = @transform_1, window_bounds = array<i64: 2, 7, 16, 16>}, {pipeline_mode = #tpu.pipeline_mode<synchronous>, transform_indices = @transform_2, window_bounds = array<i64: 7, 16, 16>}, {transform_indices = @transform_3, window_bounds = array<i64: 1, 1, 16, 16>}]} {
    %c0 = arith.constant 0 : index
    %c0_0 = arith.constant 0 : index
    %c0_1 = arith.constant 0 : index
    %c0_2 = arith.constant 0 : index
    %0 = vector.load %arg2[%c0, %c0_0, %c0_1, %c0_2] : memref<1x4x16x16xf32, #tpu.memory_space<vmem>>, vector<1x4x16x16xf32>
    %1 = vector.shape_cast %0 : vector<1x4x16x16xf32> to vector<4x16x16xf32>
    %cst = arith.constant dense<0.000000e+00> : vector<16x16xf32>
    %2 = vector.multi_reduction <add>, %1, %cst [0] : vector<4x16x16xf32> to vector<16x16xf32>
    %cst_3 = arith.constant dense<0xFF800000> : vector<16x16xf32>
    %3 = vector.multi_reduction <maximumf>, %1, %cst_3 [0] : vector<4x16x16xf32> to vector<16x16xf32>
    %c0_i32 = arith.constant 0 : i32
    %4 = arith.cmpi eq, %arg1, %c0_i32 : i32
    %5 = arith.extui %4 : i1 to i32
    %c0_i32_4 = arith.constant 0 : i32
    %6 = arith.cmpi ne, %5, %c0_i32_4 : i32
    scf.if %6 {
      %c0_9 = arith.constant 0 : index
      %c0_10 = arith.constant 0 : index
      %13 = vector.load %arg6[%c0_9, %c0_10] : memref<16x16xf32, #tpu.memory_space<vmem>>, vector<16x16xf32>
      tpu.vector_store %arg6[%c0_9, %c0_10], %2 {strides = array<i32>} : memref<16x16xf32, #tpu.memory_space<vmem>>, vector<16x16xf32>,
      %c0_11 = arith.constant 0 : index
      %c0_12 = arith.constant 0 : index
      %14 = vector.load %arg7[%c0_11, %c0_12] : memref<16x16xf32, #tpu.memory_space<vmem>>, vector<16x16xf32>
      tpu.vector_store %arg7[%c0_11, %c0_12], %3 {strides = array<i32>} : memref<16x16xf32, #tpu.memory_space<vmem>>, vector<16x16xf32>,
    } else {
    }
    %c0_i32_5 = arith.constant 0 : i32
    %7 = arith.cmpi sgt, %arg1, %c0_i32_5 : i32
    %8 = arith.extui %7 : i1 to i32
    %c0_i32_6 = arith.constant 0 : i32
    %9 = arith.cmpi ne, %8, %c0_i32_6 : i32
    scf.if %9 {
      %c0_9 = arith.constant 0 : index
      %c0_10 = arith.constant 0 : index
      %13 = vector.load %arg6[%c0_9, %c0_10] : memref<16x16xf32, #tpu.memory_space<vmem>>, vector<16x16xf32>
      %14 = arith.addf %13, %2 : vector<16x16xf32>
      %c0_11 = arith.constant 0 : index
      %c0_12 = arith.constant 0 : index
      %15 = vector.load %arg6[%c0_11, %c0_12] : memref<16x16xf32, #tpu.memory_space<vmem>>, vector<16x16xf32>
      tpu.vector_store %arg6[%c0_11, %c0_12], %14 {strides = array<i32>} : memref<16x16xf32, #tpu.memory_space<vmem>>, vector<16x16xf32>,
      %c0_13 = arith.constant 0 : index
      %c0_14 = arith.constant 0 : index
      %16 = vector.load %arg7[%c0_13, %c0_14] : memref<16x16xf32, #tpu.memory_space<vmem>>, vector<16x16xf32>
      %17 = arith.maximumf %16, %3 : vector<16x16xf32>
      %c0_15 = arith.constant 0 : index
      %c0_16 = arith.constant 0 : index
      %18 = vector.load %arg7[%c0_15, %c0_16] : memref<16x16xf32, #tpu.memory_space<vmem>>, vector<16x16xf32>
      tpu.vector_store %arg7[%c0_15, %c0_16], %17 {strides = array<i32>} : memref<16x16xf32, #tpu.memory_space<vmem>>, vector<16x16xf32>,
    } else {
    }
    %c0_i32_7 = arith.constant 0 : i32
    %10 = arith.cmpi eq, %arg1, %c0_i32_7 : i32
    %11 = arith.extui %10 : i1 to i32
    %c0_i32_8 = arith.constant 0 : i32
    %12 = arith.cmpi ne, %11, %c0_i32_8 : i32
    scf.if %12 {
      %c0_9 = arith.constant 0 : index
      %c0_10 = arith.constant 0 : index
      %13 = vector.load %arg6[%c0_9, %c0_10] : memref<16x16xf32, #tpu.memory_space<vmem>>, vector<16x16xf32>
      %c0_11 = arith.constant 0 : index
      %c0_12 = arith.constant 0 : index
      %14 = vector.load %arg7[%c0_11, %c0_12] : memref<16x16xf32, #tpu.memory_space<vmem>>, vector<16x16xf32>
      %c0_13 = arith.constant 0 : index
      %c0_14 = arith.constant 0 : index
      %c0_15 = arith.constant 0 : index
      %c0_16 = arith.constant 0 : index
      %15 = vector.load %arg3[%c0_13, %c0_14, %c0_15, %c0_16] : memref<2x7x16x16xf32, #tpu.memory_space<vmem>>, vector<1x1x16x16xf32>
      %16 = vector.shape_cast %15 : vector<1x1x16x16xf32> to vector<16x16xf32>
      %cst_17 = arith.constant dense<0.000000e+00> : vector<16x16xf32>
      %17 = tpu.matmul %13, %16, %cst_17 {dimension_numbers = #tpu.dot_dimension_numbers<[1], [0], [0], [1], [0, 0, 1, 1], [], []>} : vector<16x16xf32>, vector<16x16xf32>, vector<16x16xf32> -> vector<16x16xf32>
      %c1 = arith.constant 1 : index
      %c0_18 = arith.constant 0 : index
      %c0_19 = arith.constant 0 : index
      %c0_20 = arith.constant 0 : index
      %18 = vector.load %arg3[%c1, %c0_18, %c0_19, %c0_20] : memref<2x7x16x16xf32, #tpu.memory_space<vmem>>, vector<1x1x16x16xf32>
      %19 = vector.shape_cast %18 : vector<1x1x16x16xf32> to vector<16x16xf32>
      %cst_21 = arith.constant dense<0.000000e+00> : vector<16x16xf32>
      %20 = tpu.matmul %14, %19, %cst_21 {dimension_numbers = #tpu.dot_dimension_numbers<[1], [0], [0], [1], [0, 0, 1, 1], [], []>} : vector<16x16xf32>, vector<16x16xf32>, vector<16x16xf32> -> vector<16x16xf32>
      %21 = arith.addf %17, %20 : vector<16x16xf32>
      %c0_22 = arith.constant 0 : index
      %c0_23 = arith.constant 0 : index
      %c0_24 = arith.constant 0 : index
      %22 = vector.load %arg4[%c0_22, %c0_23, %c0_24] : memref<7x16x16xf32, #tpu.memory_space<vmem>>, vector<1x16x16xf32>
      %23 = vector.shape_cast %22 : vector<1x16x16xf32> to vector<16x16xf32>
      %cst_25 = arith.constant dense<0.000000e+00> : vector<16x16xf32>
      %24 = tpu.matmul %23, %21, %cst_25 {dimension_numbers = #tpu.dot_dimension_numbers<[1], [0], [0], [1], [0, 0, 1, 1], [], []>} : vector<16x16xf32>, vector<16x16xf32>, vector<16x16xf32> -> vector<16x16xf32>
      %c0_26 = arith.constant 0 : index
      %c1_27 = arith.constant 1 : index
      %c0_28 = arith.constant 0 : index
      %c0_29 = arith.constant 0 : index
      %25 = vector.load %arg3[%c0_26, %c1_27, %c0_28, %c0_29] : memref<2x7x16x16xf32, #tpu.memory_space<vmem>>, vector<1x1x16x16xf32>
      %26 = vector.shape_cast %25 : vector<1x1x16x16xf32> to vector<16x16xf32>
      %cst_30 = arith.constant dense<0.000000e+00> : vector<16x16xf32>
      %27 = tpu.matmul %13, %26, %cst_30 {dimension_numbers = #tpu.dot_dimension_numbers<[1], [0], [0], [1], [0, 0, 1, 1], [], []>} : vector<16x16xf32>, vector<16x16xf32>, vector<16x16xf32> -> vector<16x16xf32>
      %c1_31 = arith.constant 1 : index
      %c1_32 = arith.constant 1 : index
      %c0_33 = arith.constant 0 : index
      %c0_34 = arith.constant 0 : index
      %28 = vector.load %arg3[%c1_31, %c1_32, %c0_33, %c0_34] : memref<2x7x16x16xf32, #tpu.memory_space<vmem>>, vector<1x1x16x16xf32>
      %29 = vector.shape_cast %28 : vector<1x1x16x16xf32> to vector<16x16xf32>
      %cst_35 = arith.constant dense<0.000000e+00> : vector<16x16xf32>
      %30 = tpu.matmul %14, %29, %cst_35 {dimension_numbers = #tpu.dot_dimension_numbers<[1], [0], [0], [1], [0, 0, 1, 1], [], []>} : vector<16x16xf32>, vector<16x16xf32>, vector<16x16xf32> -> vector<16x16xf32>
      %31 = arith.addf %27, %30 : vector<16x16xf32>
      %c1_36 = arith.constant 1 : index
      %c0_37 = arith.constant 0 : index
      %c0_38 = arith.constant 0 : index
      %32 = vector.load %arg4[%c1_36, %c0_37, %c0_38] : memref<7x16x16xf32, #tpu.memory_space<vmem>>, vector<1x16x16xf32>
      %33 = vector.shape_cast %32 : vector<1x16x16xf32> to vector<16x16xf32>
      %cst_39 = arith.constant dense<0.000000e+00> : vector<16x16xf32>
      %34 = tpu.matmul %33, %31, %cst_39 {dimension_numbers = #tpu.dot_dimension_numbers<[1], [0], [0], [1], [0, 0, 1, 1], [], []>} : vector<16x16xf32>, vector<16x16xf32>, vector<16x16xf32> -> vector<16x16xf32>
      %35 = arith.addf %24, %34 : vector<16x16xf32>
      %c0_40 = arith.constant 0 : index
      %c2 = arith.constant 2 : index
      %c0_41 = arith.constant 0 : index
      %c0_42 = arith.constant 0 : index
      %36 = vector.load %arg3[%c0_40, %c2, %c0_41, %c0_42] : memref<2x7x16x16xf32, #tpu.memory_space<vmem>>, vector<1x1x16x16xf32>
      %37 = vector.shape_cast %36 : vector<1x1x16x16xf32> to vector<16x16xf32>
      %cst_43 = arith.constant dense<0.000000e+00> : vector<16x16xf32>
      %38 = tpu.matmul %13, %37, %cst_43 {dimension_numbers = #tpu.dot_dimension_numbers<[1], [0], [0], [1], [0, 0, 1, 1], [], []>} : vector<16x16xf32>, vector<16x16xf32>, vector<16x16xf32> -> vector<16x16xf32>
      %c1_44 = arith.constant 1 : index
      %c2_45 = arith.constant 2 : index
      %c0_46 = arith.constant 0 : index
      %c0_47 = arith.constant 0 : index
      %39 = vector.load %arg3[%c1_44, %c2_45, %c0_46, %c0_47] : memref<2x7x16x16xf32, #tpu.memory_space<vmem>>, vector<1x1x16x16xf32>
      %40 = vector.shape_cast %39 : vector<1x1x16x16xf32> to vector<16x16xf32>
      %cst_48 = arith.constant dense<0.000000e+00> : vector<16x16xf32>
      %41 = tpu.matmul %14, %40, %cst_48 {dimension_numbers = #tpu.dot_dimension_numbers<[1], [0], [0], [1], [0, 0, 1, 1], [], []>} : vector<16x16xf32>, vector<16x16xf32>, vector<16x16xf32> -> vector<16x16xf32>
      %42 = arith.addf %38, %41 : vector<16x16xf32>
      %c2_49 = arith.constant 2 : index
      %c0_50 = arith.constant 0 : index
      %c0_51 = arith.constant 0 : index
      %43 = vector.load %arg4[%c2_49, %c0_50, %c0_51] : memref<7x16x16xf32, #tpu.memory_space<vmem>>, vector<1x16x16xf32>
      %44 = vector.shape_cast %43 : vector<1x16x16xf32> to vector<16x16xf32>
      %cst_52 = arith.constant dense<0.000000e+00> : vector<16x16xf32>
      %45 = tpu.matmul %44, %42, %cst_52 {dimension_numbers = #tpu.dot_dimension_numbers<[1], [0], [0], [1], [0, 0, 1, 1], [], []>} : vector<16x16xf32>, vector<16x16xf32>, vector<16x16xf32> -> vector<16x16xf32>
      %46 = arith.addf %35, %45 : vector<16x16xf32>
      %c0_53 = arith.constant 0 : index
      %c3 = arith.constant 3 : index
      %c0_54 = arith.constant 0 : index
      %c0_55 = arith.constant 0 : index
      %47 = vector.load %arg3[%c0_53, %c3, %c0_54, %c0_55] : memref<2x7x16x16xf32, #tpu.memory_space<vmem>>, vector<1x1x16x16xf32>
      %48 = vector.shape_cast %47 : vector<1x1x16x16xf32> to vector<16x16xf32>
      %cst_56 = arith.constant dense<0.000000e+00> : vector<16x16xf32>
      %49 = tpu.matmul %13, %48, %cst_56 {dimension_numbers = #tpu.dot_dimension_numbers<[1], [0], [0], [1], [0, 0, 1, 1], [], []>} : vector<16x16xf32>, vector<16x16xf32>, vector<16x16xf32> -> vector<16x16xf32>
      %c1_57 = arith.constant 1 : index
      %c3_58 = arith.constant 3 : index
      %c0_59 = arith.constant 0 : index
      %c0_60 = arith.constant 0 : index
      %50 = vector.load %arg3[%c1_57, %c3_58, %c0_59, %c0_60] : memref<2x7x16x16xf32, #tpu.memory_space<vmem>>, vector<1x1x16x16xf32>
      %51 = vector.shape_cast %50 : vector<1x1x16x16xf32> to vector<16x16xf32>
      %cst_61 = arith.constant dense<0.000000e+00> : vector<16x16xf32>
      %52 = tpu.matmul %14, %51, %cst_61 {dimension_numbers = #tpu.dot_dimension_numbers<[1], [0], [0], [1], [0, 0, 1, 1], [], []>} : vector<16x16xf32>, vector<16x16xf32>, vector<16x16xf32> -> vector<16x16xf32>
      %53 = arith.addf %49, %52 : vector<16x16xf32>
      %c3_62 = arith.constant 3 : index
      %c0_63 = arith.constant 0 : index
      %c0_64 = arith.constant 0 : index
      %54 = vector.load %arg4[%c3_62, %c0_63, %c0_64] : memref<7x16x16xf32, #tpu.memory_space<vmem>>, vector<1x16x16xf32>
      %55 = vector.shape_cast %54 : vector<1x16x16xf32> to vector<16x16xf32>
      %cst_65 = arith.constant dense<0.000000e+00> : vector<16x16xf32>
      %56 = tpu.matmul %55, %53, %cst_65 {dimension_numbers = #tpu.dot_dimension_numbers<[1], [0], [0], [1], [0, 0, 1, 1], [], []>} : vector<16x16xf32>, vector<16x16xf32>, vector<16x16xf32> -> vector<16x16xf32>
      %57 = arith.addf %46, %56 : vector<16x16xf32>
      %c0_66 = arith.constant 0 : index
      %c4 = arith.constant 4 : index
      %c0_67 = arith.constant 0 : index
      %c0_68 = arith.constant 0 : index
      %58 = vector.load %arg3[%c0_66, %c4, %c0_67, %c0_68] : memref<2x7x16x16xf32, #tpu.memory_space<vmem>>, vector<1x1x16x16xf32>
      %59 = vector.shape_cast %58 : vector<1x1x16x16xf32> to vector<16x16xf32>
      %cst_69 = arith.constant dense<0.000000e+00> : vector<16x16xf32>
      %60 = tpu.matmul %13, %59, %cst_69 {dimension_numbers = #tpu.dot_dimension_numbers<[1], [0], [0], [1], [0, 0, 1, 1], [], []>} : vector<16x16xf32>, vector<16x16xf32>, vector<16x16xf32> -> vector<16x16xf32>
      %c1_70 = arith.constant 1 : index
      %c4_71 = arith.constant 4 : index
      %c0_72 = arith.constant 0 : index
      %c0_73 = arith.constant 0 : index
      %61 = vector.load %arg3[%c1_70, %c4_71, %c0_72, %c0_73] : memref<2x7x16x16xf32, #tpu.memory_space<vmem>>, vector<1x1x16x16xf32>
      %62 = vector.shape_cast %61 : vector<1x1x16x16xf32> to vector<16x16xf32>
      %cst_74 = arith.constant dense<0.000000e+00> : vector<16x16xf32>
      %63 = tpu.matmul %14, %62, %cst_74 {dimension_numbers = #tpu.dot_dimension_numbers<[1], [0], [0], [1], [0, 0, 1, 1], [], []>} : vector<16x16xf32>, vector<16x16xf32>, vector<16x16xf32> -> vector<16x16xf32>
      %64 = arith.addf %60, %63 : vector<16x16xf32>
      %c4_75 = arith.constant 4 : index
      %c0_76 = arith.constant 0 : index
      %c0_77 = arith.constant 0 : index
      %65 = vector.load %arg4[%c4_75, %c0_76, %c0_77] : memref<7x16x16xf32, #tpu.memory_space<vmem>>, vector<1x16x16xf32>
      %66 = vector.shape_cast %65 : vector<1x16x16xf32> to vector<16x16xf32>
      %cst_78 = arith.constant dense<0.000000e+00> : vector<16x16xf32>
      %67 = tpu.matmul %66, %64, %cst_78 {dimension_numbers = #tpu.dot_dimension_numbers<[1], [0], [0], [1], [0, 0, 1, 1], [], []>} : vector<16x16xf32>, vector<16x16xf32>, vector<16x16xf32> -> vector<16x16xf32>
      %68 = arith.addf %57, %67 : vector<16x16xf32>
      %c0_79 = arith.constant 0 : index
      %c5 = arith.constant 5 : index
      %c0_80 = arith.constant 0 : index
      %c0_81 = arith.constant 0 : index
      %69 = vector.load %arg3[%c0_79, %c5, %c0_80, %c0_81] : memref<2x7x16x16xf32, #tpu.memory_space<vmem>>, vector<1x1x16x16xf32>
      %70 = vector.shape_cast %69 : vector<1x1x16x16xf32> to vector<16x16xf32>
      %cst_82 = arith.constant dense<0.000000e+00> : vector<16x16xf32>
      %71 = tpu.matmul %13, %70, %cst_82 {dimension_numbers = #tpu.dot_dimension_numbers<[1], [0], [0], [1], [0, 0, 1, 1], [], []>} : vector<16x16xf32>, vector<16x16xf32>, vector<16x16xf32> -> vector<16x16xf32>
      %c1_83 = arith.constant 1 : index
      %c5_84 = arith.constant 5 : index
      %c0_85 = arith.constant 0 : index
      %c0_86 = arith.constant 0 : index
      %72 = vector.load %arg3[%c1_83, %c5_84, %c0_85, %c0_86] : memref<2x7x16x16xf32, #tpu.memory_space<vmem>>, vector<1x1x16x16xf32>
      %73 = vector.shape_cast %72 : vector<1x1x16x16xf32> to vector<16x16xf32>
      %cst_87 = arith.constant dense<0.000000e+00> : vector<16x16xf32>
      %74 = tpu.matmul %14, %73, %cst_87 {dimension_numbers = #tpu.dot_dimension_numbers<[1], [0], [0], [1], [0, 0, 1, 1], [], []>} : vector<16x16xf32>, vector<16x16xf32>, vector<16x16xf32> -> vector<16x16xf32>
      %75 = arith.addf %71, %74 : vector<16x16xf32>
      %c5_88 = arith.constant 5 : index
      %c0_89 = arith.constant 0 : index
      %c0_90 = arith.constant 0 : index
      %76 = vector.load %arg4[%c5_88, %c0_89, %c0_90] : memref<7x16x16xf32, #tpu.memory_space<vmem>>, vector<1x16x16xf32>
      %77 = vector.shape_cast %76 : vector<1x16x16xf32> to vector<16x16xf32>
      %cst_91 = arith.constant dense<0.000000e+00> : vector<16x16xf32>
      %78 = tpu.matmul %77, %75, %cst_91 {dimension_numbers = #tpu.dot_dimension_numbers<[1], [0], [0], [1], [0, 0, 1, 1], [], []>} : vector<16x16xf32>, vector<16x16xf32>, vector<16x16xf32> -> vector<16x16xf32>
      %79 = arith.addf %68, %78 : vector<16x16xf32>
      %c0_92 = arith.constant 0 : index
      %c6 = arith.constant 6 : index
      %c0_93 = arith.constant 0 : index
      %c0_94 = arith.constant 0 : index
      %80 = vector.load %arg3[%c0_92, %c6, %c0_93, %c0_94] : memref<2x7x16x16xf32, #tpu.memory_space<vmem>>, vector<1x1x16x16xf32>
      %81 = vector.shape_cast %80 : vector<1x1x16x16xf32> to vector<16x16xf32>
      %cst_95 = arith.constant dense<0.000000e+00> : vector<16x16xf32>
      %82 = tpu.matmul %13, %81, %cst_95 {dimension_numbers = #tpu.dot_dimension_numbers<[1], [0], [0], [1], [0, 0, 1, 1], [], []>} : vector<16x16xf32>, vector<16x16xf32>, vector<16x16xf32> -> vector<16x16xf32>
      %c1_96 = arith.constant 1 : index
      %c6_97 = arith.constant 6 : index
      %c0_98 = arith.constant 0 : index
      %c0_99 = arith.constant 0 : index
      %83 = vector.load %arg3[%c1_96, %c6_97, %c0_98, %c0_99] : memref<2x7x16x16xf32, #tpu.memory_space<vmem>>, vector<1x1x16x16xf32>
      %84 = vector.shape_cast %83 : vector<1x1x16x16xf32> to vector<16x16xf32>
      %cst_100 = arith.constant dense<0.000000e+00> : vector<16x16xf32>
      %85 = tpu.matmul %14, %84, %cst_100 {dimension_numbers = #tpu.dot_dimension_numbers<[1], [0], [0], [1], [0, 0, 1, 1], [], []>} : vector<16x16xf32>, vector<16x16xf32>, vector<16x16xf32> -> vector<16x16xf32>
      %86 = arith.addf %82, %85 : vector<16x16xf32>
      %c6_101 = arith.constant 6 : index
      %c0_102 = arith.constant 0 : index
      %c0_103 = arith.constant 0 : index
      %87 = vector.load %arg4[%c6_101, %c0_102, %c0_103] : memref<7x16x16xf32, #tpu.memory_space<vmem>>, vector<1x16x16xf32>
      %88 = vector.shape_cast %87 : vector<1x16x16xf32> to vector<16x16xf32>
      %cst_104 = arith.constant dense<0.000000e+00> : vector<16x16xf32>
      %89 = tpu.matmul %88, %86, %cst_104 {dimension_numbers = #tpu.dot_dimension_numbers<[1], [0], [0], [1], [0, 0, 1, 1], [], []>} : vector<16x16xf32>, vector<16x16xf32>, vector<16x16xf32> -> vector<16x16xf32>
      %90 = arith.addf %79, %89 : vector<16x16xf32>
      %cst_105 = arith.constant 5.000000e-01 : f32
      %91 = vector.broadcast %cst_105 : f32 to vector<16x16xf32>
      %92 = arith.mulf %91, %90 : vector<16x16xf32>
      %93 = math.tanh %92 : vector<16x16xf32>
      %cst_106 = arith.constant 5.000000e-01 : f32
      %94 = vector.broadcast %cst_106 : f32 to vector<16x16xf32>
      %95 = arith.mulf %94, %93 : vector<16x16xf32>
      %cst_107 = arith.constant 5.000000e-01 : f32
      %96 = vector.broadcast %cst_107 : f32 to vector<16x16xf32>
      %97 = arith.addf %95, %96 : vector<16x16xf32>
      %c0_108 = arith.constant 0 : index
      %c0_109 = arith.constant 0 : index
      %c0_110 = arith.constant 0 : index
      %c0_111 = arith.constant 0 : index
      %98 = vector.load %arg5[%c0_108, %c0_109, %c0_110, %c0_111] : memref<1x1x16x16xf32, #tpu.memory_space<vmem>>, vector<1x1x16x16xf32>
      %99 = vector.shape_cast %98 : vector<1x1x16x16xf32> to vector<16x16xf32>
      %100 = vector.shape_cast %97 : vector<16x16xf32> to vector<1x1x16x16xf32>
      tpu.vector_store %arg5[%c0_108, %c0_109, %c0_110, %c0_111], %100 {strides = array<i32>} : memref<1x1x16x16xf32, #tpu.memory_space<vmem>>, vector<1x1x16x16xf32>,
    } else {
    }
    return
  }
  func.func @transform_0(%arg0: i32, %arg1: i32) -> (i32, i32, i32, i32) {
    %c0_i32 = arith.constant 0 : i32
    %c0_i32_0 = arith.constant 0 : i32
    %c0_i32_1 = arith.constant 0 : i32
    return %arg0, %arg1, %c0_i32, %c0_i32_0 : i32, i32, i32, i32
  }
  func.func @transform_1(%arg0: i32, %arg1: i32) -> (i32, i32, i32, i32) {
    %c0_i32 = arith.constant 0 : i32
    %c0_i32_0 = arith.constant 0 : i32
    %c0_i32_1 = arith.constant 0 : i32
    %c0_i32_2 = arith.constant 0 : i32
    %c0_i32_3 = arith.constant 0 : i32
    return %c0_i32, %c0_i32_0, %c0_i32_1, %c0_i32_2 : i32, i32, i32, i32
  }
  func.func @transform_2(%arg0: i32, %arg1: i32) -> (i32, i32, i32) {
    %c0_i32 = arith.constant 0 : i32
    %c0_i32_0 = arith.constant 0 : i32
    %c0_i32_1 = arith.constant 0 : i32
    %c0_i32_2 = arith.constant 0 : i32
    return %c0_i32, %c0_i32_0, %c0_i32_1 : i32, i32, i32
  }
  func.func @transform_3(%arg0: i32, %arg1: i32) -> (i32, i32, i32, i32) {
    %c0_i32 = arith.constant 0 : i32
    %c0_i32_0 = arith.constant 0 : i32
    %c0_i32_1 = arith.constant 0 : i32
    %c0_i32_2 = arith.constant 0 : i32
    return %arg0, %c0_i32, %c0_i32_0, %c0_i32_1 : i32, i32, i32, i32
  }
}

</mosaic_0001>

<bundles_post_ra>
// kernel: tpu_custom_call.1
= control target key start
LH: loop header
LB: loop body
LE: loop exit
PB: predicated region body
PF: predicated region fallthrough
CT: control target
= control target key end

     0   :  { %8 = vsyncpa [#allocation5], 0  ;;  %s3008_s0 = inlined_call_operand.hbm [shape: f32[2,4,16,16], index: 0, kind: input, shape index: {}]   ;;  %s3009_s1 = inlined_call_operand.hbm [shape: f32[2,7,16,16], index: 1, kind: input, shape index: {}]   ;;  %s3010_s2 = inlined_call_operand.hbm [shape: f32[7,16,16], index: 2, kind: input, shape index: {}]   ;;  %s3011_s3 = inlined_call_operand.hbm [shape: f32[2,1,16,16], index: 3, kind: output, shape index: {}]  }
   0x1   :  { %10 = vsyncpa [#allocation5 + $0x1], 0 }
   0x2   :  { %11 = vsyncpa [#allocation8], 0 }
   0x3   :  { %12 = vsyncpa [#allocation6], 0 }
   0x4   :  { %14 = vsyncpa [#allocation6 + $0x1], 0  ;;  %s2710_s12 = smov 0   ;;  %s2712_s13 = smov 0  }
   0x5   :  { %s2714_s14 = smov 0   ;;  %s2716_s15 = smov 0  }
   0x6   :  { %s2718_s16 = smov 0   ;;  %s2720_s17 = smov 0  }
   0x7 LB: > { %s2131_s18 = sadd.s32 4294967295, %s2680_s17   ;;  %s2132_s19 = sadd.s32 4294967294, %s2680_s17   ;;  %s2680_s17 = sphi %s2720_s17, %s20_s17   ;;  %s2676_s16 = sphi %s2718_s16, %s3028_s16   ;;  %s2672_s15 = sphi %s2716_s15, %s3027_s15   ;;  %s2668_s14 = sphi %s2714_s14, %s3026_s14   ;;  %s2664_s13 = sphi %s2712_s13, %s3025_s13   ;;  %s2660_s12 = sphi %s2710_s12, %s3024_s12  }
   0x8   : > { %p54_p0 = scmp.ne.s32.totalorder %s2664_s13, %s2660_s12  ;;  %p2744_p1 = scmp.eq.s32.totalorder %s2131_s18, 0 }
   0x9   : > { %p2748_p2 = scmp.eq.s32.totalorder %s2131_s18, 1  ;;  %p126_p3 = scmp.eq.s32.totalorder %s2132_s19, 1 }
   0xa   : > { %p2754_p4 = por %p2744_p1, %p54_p0  ;;  %p2133_p5 = scmp.ge.s32.totalorder %s2680_s17, 1 }
   0xb   : > { %p2759_p6 = por %p126_p3, %p54_p0  ;;  %p133_p7 = scmp.lt.s32.totalorder %s2680_s17, 3 }
   0xc   : > { %s2682_s25 = smov [#allocation7]   ;;  %s2683_s28 = smov [#allocation9]  }
   0xd   : > { %s3016_s23 = scalar_select %p2759_p6, 1, 0 }
   0xe   : > { %p2764_p8 = pnand %p2133_p5, %p133_p7  ;;  %s145_s26 = sshll.u32 %s2682_s25, 4  ;;  %s146_s26 = int_to_ptr.vmem [resolvable:$true] %s145_s26 }
   0xf   : > { %s158_s29 = sshll.u32 %s2683_s28, 4  ;;  %s2527_s30 = scalar_lea.vmem %s146_s26, 3584  ;;  %s159_s29 = int_to_ptr.vmem [resolvable:$true] %s158_s29 }
  0x10   : > { %p2437_p9 = pneg %p2764_p8  ;;  %p2528_p13 = scmp.ne.s32.totalorder %s146_s26, %s2527_s30 }
  0x11   : > { %p2535_p5 = scmp.lt.s32.totalorder %s146_s26, %s146_s26  ;;  %p2536_p7 = scmp.lt.s32.totalorder %s2527_s30, %s2527_s30 }
  0x12   : > { %p2773_p11 = pnand %p2437_p9, %p2744_p1 }
  0x13   : > { %p2537_p10 = por %p2536_p7, %p2535_p5 }
  0x14   : > { %p2518_p12 = pneg %p2773_p11 }
  0x16   : > { %p2530_p0 = pnand %p2528_p13, %p2518_p12 }
  0x18   : > { %p2531_p3 = pneg %p2530_p0 }
  0x1a   : > { %p2538_p9 = pnand %p2537_p10, %p2531_p3 }
  0x1c   : > { %2541 = shalt.err (!%p2538_p9)
}
  0x1d   : > { %s3012_s4 = smov 128   ;;  %s2685_s5 = smov 8  }
  0x1e   : > { %2440 = dma.hbm_to_vmem [thread:$0]  (!%p2773_p11), %s3009_s1, 3584, %s146_s26, [#allocation8], %s3012_s4, %s3012_s4, %s2685_s5  }
  0x1f   : > { %s2553_s8 = scalar_lea.vmem %s159_s29, 1792  ;;  %p2561_p10 = scmp.lt.s32.totalorder %s159_s29, %s159_s29 }
  0x20   : > { %p2554_p13 = scmp.ne.s32.totalorder %s159_s29, %s2553_s8  ;;  %p2562_p3 = scmp.lt.s32.totalorder %s2553_s8, %s2553_s8 }
  0x22   : > { %p2556_p0 = pnand %p2554_p13, %p2518_p12  ;;  %p2563_p7 = por %p2562_p3, %p2561_p10 }
  0x24   : > { %p2557_p5 = pneg %p2556_p0 }
  0x26   : > { %p2564_p9 = pnand %p2563_p7, %p2557_p5 }
  0x28   : > { %2567 = shalt.err (!%p2564_p9)
}
  0x29   : > { %2443 = dma.hbm_to_vmem [thread:$0]  (!%p2773_p11), %s3010_s2, 1792, %s159_s29, [#allocation8], %s3012_s4, %s3012_s4, %s2685_s5  }
  0x2a   : > { %s32_s11 = sadd.s32 1, %s2676_s16  ;;  %s41_s18 = sadd.s32 1, %s2668_s14 }
  0x2b   : > { %p34_p12 = scmp.ge.s32.totalorder %s32_s11, 2  ;;  %p48_p13 = scmp.ne.s32.totalorder %s2668_s14, %s2664_s13 }
  0x2c   : > { %p49_p0 = scmp.eq.s32.totalorder %s2680_s17, 0  ;;  %p2454_p5 = scmp.lt.s32.totalorder %s2680_s17, 2 }
  0x2d   : > { %s3030_s11 = smov (%p34_p12, %s32_s11), 0  ;;  %p2811_p3 = por %p2748_p2, %p48_p13 }
  0x2e   : > { %p50_p10 = por %p49_p0, %p48_p13  ;;  %s36_s25 = ssub.s32 %s2676_s16, %s3030_s11 }
  0x2f   : > { %s172_s26 = sand.u32 1, %s2668_s14   ;;  %p39_p7 = scmp.eq.s32.totalorder %s36_s25, 0 }
  0x30   : > { %s2137_s27 = sshll.u32 %s172_s26, 6  ;;  %s2192_s28 = sshll.u32 %s2676_s16, 10 }
  0x31   : > { %s2820_s29 = scalar_select %p39_p7, %s2668_s14, %s41_s18  }
  0x32   : > { %s185_s7 = scalar_lea.hbm %s3008_s0, %s2192_s28  ;;  %s176_s8 = scalar_lea.vmem [#allocation4], %s2137_s27 }
  0x33   : > { %s186_s9 = sshll.u32 %s176_s8, 4  ;;  %p2827_p11 = pnand %p2454_p5, %p50_p10  ;;  %s187_s9 = int_to_ptr.vmem [resolvable:$true] %s186_s9 }
  0x34   : > { %s173_s10 = scalar_lea.sflag [#allocation5], %s172_s26  ;;  %s2581_s25 = scalar_lea.vmem %s187_s9, 1024 }
  0x35   : > { %p2570_p2 = pneg %p2827_p11  ;;  %p2582_p9 = scmp.ne.s32.totalorder %s187_s9, %s2581_s25 }
  0x36   : > { %s2686_s18 = smov [#allocation4]  }
  0x37   : > { %p2584_p12 = pnand %p2582_p9, %p2570_p2  ;;  %s2586_s4 = sshll.u32 %s2686_s18, 4  ;;  %s2587_s4 = int_to_ptr.vmem [resolvable:$false] %s2586_s4 }
  0x38   : > { %s2588_s28 = scalar_lea.vmem %s2587_s4, 2048  ;;  %p2589_p0 = scmp.lt.s32.totalorder %s187_s9, %s2587_s4 }
  0x39   : > { %p2585_p13 = pneg %p2584_p12  ;;  %p2590_p7 = scmp.lt.s32.totalorder %s2588_s28, %s2581_s25 }
  0x3b   : > { %p2591_p6 = por %p2590_p7, %p2589_p0 }
  0x3d   : > { %p2592_p5 = pnand %p2591_p6, %p2585_p13 }
  0x3f   : > { %2595 = shalt.err (!%p2592_p5)
}
  0x40   : > { %s3021_s27 = smov 128   ;;  %198 = sbr.rel (%p2764_p8) target bundleno = 1544 (0x608), region = 32 }
  0x41   : > { %2447 = dma.hbm_to_vmem [thread:$0]  (!%p2827_p11), %s185_s7, 1024, %s187_s9, %s173_s10, %s3021_s27, %s3021_s27, %s2685_s5  }
  0x42   : > { %s2841_s26 = sand.u32 (!%p2764_p8), 1, %s2664_s13  }
  0x43   : > { %s2141_s4 = sshll.u32 (!%p2764_p8), %s2841_s26, 6  ;;  %s201_s30 = scalar_lea.sflag (!%p2764_p8), [#allocation5], %s2841_s26 }
  0x44   : > { %s204_s6 = scalar_lea.vmem (!%p2764_p8), [#allocation4], %s2141_s4 }
  0x45   : > { %2647 = dma.done.wait (%p2754_p4), %s201_s30, 1024  }
  0x46   : > { %2649 = vsyncadd (%p2754_p4), %s201_s30, 4294966272 }
  0x47   : > { %2651 = dma.done.wait (%p2744_p1), [#allocation8], 5376  }
  0x48   : > { %2653 = vsyncadd (%p2744_p1), [#allocation8], 4294961920  ;;  %vm244_vm0 = vcmask 130048   ;;  %v308_v0 = vld [vmem:[#allocation7 + $0x78] sm:$0xff]  ;;  %v307_v1 = vld [vmem:[#allocation7 + $0x70] sm:$0xff]  ;;  %s2144_s20 = sshll.u32 %s2841_s26, 4 }
  0x49   : > { %v305_v2 = vld [vmem:[#allocation7 + $0x8] sm:$0xff]  ;;  %2278 = vmatprep.subr.mxu0 %v308_v0  ;;  %v236_v3 = vld [vmem:[%s204_s6] sm:$0xff]  ;;  %v238_v4 = vld [vmem:[%s204_s6 + $0x10] sm:$0xff]  ;;  %s2193_s22 = sshll.u32 %s2672_s15, 8  ;;  %s234_s24 = scalar_lea.vmem [#allocation10], %s2144_s20 }
  0x4a   : > { %2285 = vmatprep.subr.mxu1 %v305_v2  ;;  %v240_v5 = vld [vmem:[%s204_s6 + $0x20] sm:$0xff]  ;;  %2279 = vmatpush3.msra.mxu0 %v308_v0  ;;  %v242_v6 = vld [vmem:[%s204_s6 + $0x30] sm:$0xff]  ;;  %v259_v7 = vsel %vm244_vm0, %v236_v3, -inf  ;;  %v260_v8 = vsel %vm244_vm0, %v238_v4, -inf  ;;  %v237_v10 = vld [vmem:[%s204_s6 + $0x8] sm:$0xff]  ;;  %v245_v23 = vsel %vm244_vm0, %v236_v3, 0.0  ;;  %s2956_s9 = scalar_lea.hbm %s3011_s3, %s2193_s22 }
  0x4b   : > { %v261_v9 = vsel %vm244_vm0, %v240_v5, -inf  ;;  %2286 = vmatpush3.msra.mxu1 %v305_v2  ;;  %v239_v11 = vld [vmem:[%s204_s6 + $0x18] sm:$0xff]  ;;  %2280 = vmatprep.subr.mxu0 %v307_v1  ;;  %v263_v13 = vsel %vm244_vm0, %v242_v6, -inf  ;;  %v241_v14 = vld [vmem:[%s204_s6 + $0x28] sm:$0xff]  ;;  %v266_v16 = vsel %vm244_vm0, %v237_v10, -inf  ;;  %v304_v18 = vld [vmem:[#allocation7] sm:$0xff] }
  0x4c   : > { %v262_v12 = vmax.f32 %v259_v7, %v261_v9  ;;  %v243_v15 = vld [vmem:[%s204_s6 + $0x38] sm:$0xff]  ;;  %v267_v17 = vsel %vm244_vm0, %v239_v11, -inf  ;;  %2281 = vmatpush3.msra.mxu0 %v307_v1  ;;  %v264_v19 = vmax.f32 %v260_v8, %v263_v13  ;;  %v268_v20 = vsel %vm244_vm0, %v241_v14, -inf  ;;  %2287 = vmatprep.subr.mxu1 %v304_v18  ;;  %v478_v22 = vld [vmem:[#allocation7 + $0x88] sm:$0xff]  ;;  %v477_v44 = vld [vmem:[#allocation7 + $0x80] sm:$0xff]  ;;  %s2028_s5 = sshll.u32 %s234_s24, 4  ;;  %s2958_s5 = int_to_ptr.vmem [resolvable:$true] %s2028_s5 }
  0x4d   : > { %v270_v21 = vsel %vm244_vm0, %v243_v15, -inf  ;;  %v475_v24 = vld [vmem:[#allocation7 + $0x18] sm:$0xff]  ;;  %v269_v25 = vmax.f32 %v266_v16, %v268_v20  ;;  %2292 = vmatprep.subr.mxu0 %v478_v22  ;;  %2288 = vmatpush3.msra.mxu1 %v304_v18  ;;  %v246_v27 = vsel %vm244_vm0, %v238_v4, 0.0  ;;  %v248_v28 = vsel %vm244_vm0, %v240_v5, 0.0  ;;  %v474_v47 = vld [vmem:[#allocation7 + $0x10] sm:$0xff]  ;;  %v471_v48 = vld [vmem:[#allocation9] sm:$0xff] }
  0x4e   : > { %v271_v26 = vmax.f32 %v267_v17, %v270_v21  ;;  %v265_v29 = vmax.f32 %v262_v12, %v264_v19  ;;  %v247_v30 = vadd.f32 %v246_v27, %v245_v23  ;;  %v252_v31 = vsel %vm244_vm0, %v237_v10, 0.0  ;;  %2299 = vmatprep.subr.mxu1 %v475_v24  ;;  %v630_v49 = vld [vmem:[#allocation9 + $0x10] sm:$0xff]  ;;  %v472_v58 = vld [vmem:[#allocation9 + $0x8] sm:$0xff]  ;;  %v795_v0 = vld [vmem:[#allocation7 + $0x20] sm:$0xff]  ;;  %s2015_s15 = scalar_lea.sflag [#allocation6], %s2841_s26  ;;  %s2596_s21 = scalar_lea.vmem %s2958_s5, 256 }
  0x4f   : > { %v250_v33 = vsel %vm244_vm0, %v242_v6, 0.0  ;;  %v253_v34 = vsel %vm244_vm0, %v239_v11, 0.0  ;;  %v255_v35 = vsel %vm244_vm0, %v241_v14, 0.0  ;;  %v257_v38 = vsel %vm244_vm0, %v243_v15, 0.0  ;;  %v796_v60 = vld [vmem:[#allocation7 + $0x28] sm:$0xff]  ;;  %v631_v1 = vld [vmem:[#allocation9 + $0x18] sm:$0xff]  ;;  %p2597_p1 = scmp.ne.s32.totalorder %s2958_s5, %s2596_s21 }
  0x50   : > { %v272_v32 = vmax.f32 %v269_v25, %v271_v26  ;;  %279 = vst.msk [vmem:[#allocation3] sm:$0xff] %vm244_vm0, %v265_v29  ;;  %v249_v36 = vadd.f32 %v248_v28, %v247_v30  ;;  %v254_v37 = vadd.f32 %v253_v34, %v252_v31  ;;  %v799_v2 = vld [vmem:[#allocation7 + $0x98] sm:$0xff]  ;;  %v798_v3 = vld [vmem:[#allocation7 + $0x90] sm:$0xff]  ;;  %v1041_v4 = vld [vmem:[#allocation7 + $0xa8] sm:$0xff]  ;;  %s2687_s10 = smov [#allocation10]  }
  0x51   : > { %v951_v5 = vld [vmem:[#allocation9 + $0x20] sm:$0xff]  ;;  %v952_v19 = vld [vmem:[#allocation9 + $0x28] sm:$0xff]  ;;  %v1038_v20 = vld [vmem:[#allocation7 + $0x38] sm:$0xff]  ;;  %p2598_p4 = pnand %p2597_p1, %p2811_p3  ;;  %s2600_s25 = sshll.u32 %s2687_s10, 4  ;;  %s2601_s25 = int_to_ptr.vmem [resolvable:$false] %s2600_s25 }
  0x52   : > { %280 = vst.msk [vmem:[#allocation3 + $0x8] sm:$0xff] %vm244_vm0, %v272_v32  ;;  %v251_v39 = vadd.f32 %v250_v33, %v249_v36  ;;  %v256_v40 = vadd.f32 %v255_v35, %v254_v37  ;;  %v1040_v6 = vld [vmem:[#allocation7 + $0xa0] sm:$0xff]  ;;  %v1037_v21 = vld [vmem:[#allocation7 + $0x30] sm:$0xff]  ;;  %v1194_v35 = vld [vmem:[#allocation9 + $0x38] sm:$0xff]  ;;  %s2602_s18 = scalar_lea.vmem %s2601_s25, 512  ;;  %p2603_p8 = scmp.lt.s32.totalorder %s2958_s5, %s2601_s25 }
  0x53   : > { %v1193_v23 = vld [vmem:[#allocation9 + $0x30] sm:$0xff]  ;;  %v1280_v36 = vld [vmem:[#allocation7 + $0x48] sm:$0xff]  ;;  %v1279_v37 = vld [vmem:[#allocation7 + $0x40] sm:$0xff]  ;;  %p2599_p6 = pneg %p2598_p4  ;;  %p2604_p10 = scmp.lt.s32.totalorder %s2602_s18, %s2596_s21 }
  0x54   : > { %277 = vst.msk [vmem:[#allocation2] sm:$0xff] %vm244_vm0, %v251_v39  ;;  %v258_v41 = vadd.f32 %v257_v38, %v256_v40  ;;  %v1525_v38 = vld [vmem:[#allocation7 + $0xc8] sm:$0xff]  ;;  %v1435_v39 = vld [vmem:[#allocation9 + $0x40] sm:$0xff] }
  0x55   : > { %v1524_v40 = vld [vmem:[#allocation7 + $0xc0] sm:$0xff]  ;;  %p2605_p11 = por %p2604_p10, %p2603_p8 }
  0x56   : > { %278 = vst.msk [vmem:[#allocation2 + $0x8] sm:$0xff] %vm244_vm0, %v258_v41 }
  0x57   : > { %v2873_v42 = vld [vmem:[#allocation3] sm:$0xff]  ;;  %p2606_p2 = pnand %p2605_p11, %p2599_p6 }
  0x58   : > { %2282 = vmatprep.mubr.msk.f32.mxu0 %vm244_vm0, %v2873_v42 }
  0x59   : > { %v2877_v43 = vld [vmem:[#allocation3 + $0x8] sm:$0xff] }
  0x5a   : > { %2283 = vmatmul.mubr.msk.f32.vlgmr.msra.gmra.mxu0 %vm244_vm0, %v2877_v43 }
  0x5b   : > { %2293 = vmatpush3.msra.mxu0 %v478_v22  ;;  %2296 = vmatprep.mubr.msk.f32.mxu0 %vm244_vm0, %v2873_v42  ;;  %v2883_v45 = vld [vmem:[#allocation2] sm:$0xff]  ;;  %v1283_v22 = vld [vmem:[#allocation7 + $0xb8] sm:$0xff] }
  0x5c   : > { %2294 = vmatprep.subr.mxu0 %v477_v44  ;;  %2289 = vmatprep.mubr.msk.f32.mxu1 %vm244_vm0, %v2883_v45 }
  0x5d   : > { %2295 = vmatpush3.msra.mxu0 %v477_v44  ;;  %v2887_v46 = vld [vmem:[#allocation2 + $0x8] sm:$0xff] }
  0x5e   : > { %2297 = vmatmul.mubr.msk.f32.vlgmr.msra.gmra.mxu0 %vm244_vm0, %v2877_v43  ;;  %2290 = vmatmul.mubr.msk.f32.vlgmr.msra.gmra.mxu1 %vm244_vm0, %v2887_v46 }
  0x5f   : > { %2300 = vmatpush3.msra.mxu1 %v475_v24  ;;  %2303 = vmatprep.mubr.msk.f32.mxu1 %vm244_vm0, %v2883_v45  ;;  %v1282_v24 = vld [vmem:[#allocation7 + $0xb0] sm:$0xff] }
  0x60   : > { %2301 = vmatprep.subr.mxu1 %v474_v47  ;;  %2310 = vmatprep.mubr.msk.f32.mxu0 %vm244_vm0, %v630_v49 }
  0x61   : > { %2302 = vmatpush3.msra.mxu1 %v474_v47 }
  0x62   : > { %2304 = vmatmul.mubr.msk.f32.vlgmr.msra.gmra.mxu1 %vm244_vm0, %v2887_v46 }
  0x63   : > { %2317 = vmatprep.mubr.msk.f32.mxu1 %vm244_vm0, %v471_v48 }
 0x11a   : > { %v2284_v50 = vpop.f32.mrf.mxu0 }
 0x11c   : > { %v381_v51 = vpop.f32.mrf.mxu0 }
 0x11e   : > { %v2291_v52 = vpop.f32.mrf.mxu1  ;;  %v2298_v55 = vpop.f32.mrf.mxu0 }
 0x11f   : > { %v468_v53 = vadd.f32 %v2291_v52, %v2284_v50 }
 0x120   : > { %v462_v54 = vpop.f32.mrf.mxu1  ;;  %v545_v61 = vpop.f32.mrf.mxu0 }
 0x121   : > { %v463_v56 = vadd.f32 %v462_v54, %v381_v51  ;;  %2313 = vmatprep.subr.mxu1 %v468_v53 }
 0x122   : > { %v2305_v57 = vpop.f32.mrf.mxu1  ;;  %2314 = vmatpush3.msra.mxu1 %v468_v53 }
 0x123   : > { %v626_v59 = vadd.f32 %v2305_v57, %v2298_v55  ;;  %2315 = vmatprep.subr.mxu1 %v463_v56  ;;  %v1436_v55 = vld [vmem:[#allocation9 + $0x48] sm:$0xff]  ;;  %v1521_v57 = vld [vmem:[#allocation7 + $0x50] sm:$0xff] }
 0x124   : > { %v620_v62 = vpop.f32.mrf.mxu1  ;;  %2316 = vmatpush3.msra.mxu1 %v463_v56  ;;  %v1522_v56 = vld [vmem:[#allocation7 + $0x58] sm:$0xff] }
 0x125   : > { %v621_v63 = vadd.f32 %v620_v62, %v545_v61  ;;  %2306 = vmatprep.subr.mxu0 %v626_v59  ;;  %2318 = vmatmul.mubr.msk.f32.vlgmr.msra.gmra.mxu1 %vm244_vm0, %v472_v58  ;;  %v1767_v58 = vld [vmem:[#allocation7 + $0xd8] sm:$0xff] }
 0x126   : > { %2307 = vmatpush3.msra.mxu0 %v626_v59  ;;  %2327 = vmatprep.subr.mxu1 %v796_v60  ;;  %v1677_v59 = vld [vmem:[#allocation9 + $0x50] sm:$0xff] }
 0x127   : > { %2308 = vmatprep.subr.mxu0 %v621_v63  ;;  %2328 = vmatpush3.msra.mxu1 %v796_v60  ;;  %v1766_v60 = vld [vmem:[#allocation7 + $0xd0] sm:$0xff] }
 0x128   : > { %2309 = vmatpush3.msra.mxu0 %v621_v63  ;;  %2329 = vmatprep.subr.mxu1 %v795_v0 }
 0x129   : > { %2311 = vmatmul.mubr.msk.f32.vlgmr.msra.gmra.mxu0 %vm244_vm0, %v631_v1  ;;  %2320 = vmatprep.subr.mxu0 %v799_v2 }
 0x12a   : > { %2321 = vmatpush3.msra.mxu0 %v799_v2  ;;  %2330 = vmatpush3.msra.mxu1 %v795_v0 }
 0x12b   : > { %2331 = vmatprep.mubr.msk.f32.mxu1 %vm244_vm0, %v2883_v45  ;;  %2322 = vmatprep.subr.mxu0 %v798_v3 }
 0x12c   : > { %2332 = vmatmul.mubr.msk.f32.vlgmr.msra.gmra.mxu1 %vm244_vm0, %v2887_v46  ;;  %2323 = vmatpush3.msra.mxu0 %v798_v3 }
 0x12d   : > { %2324 = vmatprep.mubr.msk.f32.mxu0 %vm244_vm0, %v2873_v42  ;;  %2345 = vmatprep.mubr.msk.f32.mxu1 %vm244_vm0, %v2873_v42 }
 0x12e   : > { %2325 = vmatmul.mubr.msk.f32.vlgmr.msra.gmra.mxu0 %vm244_vm0, %v2877_v43  ;;  %2341 = vmatprep.subr.mxu1 %v1041_v4 }
 0x12f   : > { %2338 = vmatprep.mubr.msk.f32.mxu0 %vm244_vm0, %v951_v5  ;;  %2342 = vmatpush3.msra.mxu1 %v1041_v4 }
 0x130   : > { %2343 = vmatprep.subr.mxu1 %v1040_v6 }
 0x131   : > { %2344 = vmatpush3.msra.mxu1 %v1040_v6  ;;  %v1678_v6 = vld [vmem:[#allocation9 + $0x58] sm:$0xff] }
 0x132   : > { %2346 = vmatmul.mubr.msk.f32.vlgmr.msra.gmra.mxu1 %vm244_vm0, %v2877_v43 }
 0x133   : > { %2359 = vmatprep.mubr.msk.f32.mxu1 %vm244_vm0, %v1193_v23 }
 0x1e5   : > { %v2319_v7 = vpop.f32.mrf.mxu1 }
 0x1e7   : > { %v785_v8 = vpop.f32.mrf.mxu1 }
 0x1e9   : > { %v2312_v9 = vpop.f32.mrf.mxu0 }
 0x1ea   : > { %v791_v10 = vadd.f32 %v2319_v7, %v2312_v9  ;;  %v1764_v7 = vld [vmem:[#allocation7 + $0x68] sm:$0xff] }
 0x1eb   : > { %v704_v11 = vpop.f32.mrf.mxu0 }
 0x1ec   : > { %v786_v12 = vadd.f32 %v785_v8, %v704_v11  ;;  %v2333_v13 = vpop.f32.mrf.mxu1  ;;  %v1763_v8 = vld [vmem:[#allocation7 + $0x60] sm:$0xff] }
 0x1ee   : > { %v2326_v14 = vpop.f32.mrf.mxu0  ;;  %v941_v16 = vpop.f32.mrf.mxu1 }
 0x1ef   : > { %v947_v15 = vadd.f32 %v2333_v13, %v2326_v14 }
 0x1f0   : > { %v866_v17 = vpop.f32.mrf.mxu0 }
 0x1f1   : > { %v942_v18 = vadd.f32 %v941_v16, %v866_v17  ;;  %2334 = vmatprep.subr.mxu0 %v947_v15 }
 0x1f2   : > { %2335 = vmatpush3.msra.mxu0 %v947_v15  ;;  %v2347_v28 = vpop.f32.mrf.mxu1 }
 0x1f3   : > { %2336 = vmatprep.subr.mxu0 %v942_v18 }
 0x1f4   : > { %2337 = vmatpush3.msra.mxu0 %v942_v18  ;;  %v1108_v32 = vpop.f32.mrf.mxu1 }
 0x1f5   : > { %2339 = vmatmul.mubr.msk.f32.vlgmr.msra.gmra.mxu0 %vm244_vm0, %v952_v19  ;;  %2348 = vmatprep.subr.mxu0 %v1038_v20 }
 0x1f6   : > { %2349 = vmatpush3.msra.mxu0 %v1038_v20  ;;  %2352 = vmatprep.mubr.msk.f32.mxu0 %vm244_vm0, %v2883_v45 }
 0x1f7   : > { %2350 = vmatprep.subr.mxu0 %v1037_v21 }
 0x1f8   : > { %2351 = vmatpush3.msra.mxu0 %v1037_v21 }
 0x1f9   : > { %2353 = vmatmul.mubr.msk.f32.vlgmr.msra.gmra.mxu0 %vm244_vm0, %v2887_v46  ;;  %2362 = vmatprep.subr.mxu0 %v1283_v22 }
 0x1fa   : > { %2366 = vmatprep.mubr.msk.f32.mxu0 %vm244_vm0, %v2873_v42  ;;  %2363 = vmatpush3.msra.mxu0 %v1283_v22 }
 0x1fb   : > { %2364 = vmatprep.subr.mxu0 %v1282_v24 }
 0x1fc   : > { %2365 = vmatpush3.msra.mxu0 %v1282_v24 }
 0x1fd   : > { %2367 = vmatmul.mubr.msk.f32.vlgmr.msra.gmra.mxu0 %vm244_vm0, %v2877_v43 }
 0x1fe   : > { %2380 = vmatprep.mubr.msk.f32.mxu0 %vm244_vm0, %v1435_v39 }
 0x2b5   : > { %v2340_v25 = vpop.f32.mrf.mxu0 }
 0x2b6   : > { %v1035_v26 = vadd.f32 %v2340_v25, %v791_v10 }
 0x2b7   : > { %v1025_v27 = vpop.f32.mrf.mxu0 }
 0x2b8   : > { %v1034_v29 = vadd.f32 %v1025_v27, %v786_v12 }
 0x2b9   : > { %v2354_v30 = vpop.f32.mrf.mxu0 }
 0x2ba   : > { %v1189_v31 = vadd.f32 %v2354_v30, %v2347_v28 }
 0x2bb   : > { %v1183_v33 = vpop.f32.mrf.mxu0 }
 0x2bc   : > { %v1184_v34 = vadd.f32 %v1183_v33, %v1108_v32  ;;  %2355 = vmatprep.subr.mxu1 %v1189_v31 }
 0x2bd   : > { %2356 = vmatpush3.msra.mxu1 %v1189_v31  ;;  %v2368_v48 = vpop.f32.mrf.mxu0 }
 0x2be   : > { %2357 = vmatprep.subr.mxu1 %v1184_v34 }
 0x2bf   : > { %2358 = vmatpush3.msra.mxu1 %v1184_v34  ;;  %v1350_v52 = vpop.f32.mrf.mxu0 }
 0x2c0   : > { %2360 = vmatmul.mubr.msk.f32.vlgmr.msra.gmra.mxu1 %vm244_vm0, %v1194_v35  ;;  %2369 = vmatprep.subr.mxu1 %v1280_v36 }
 0x2c1   : > { %2370 = vmatpush3.msra.mxu1 %v1280_v36  ;;  %2373 = vmatprep.mubr.msk.f32.mxu1 %vm244_vm0, %v2883_v45 }
 0x2c2   : > { %2371 = vmatprep.subr.mxu1 %v1279_v37 }
 0x2c3   : > { %2372 = vmatpush3.msra.mxu1 %v1279_v37 }
 0x2c4   : > { %2374 = vmatmul.mubr.msk.f32.vlgmr.msra.gmra.mxu1 %vm244_vm0, %v2887_v46  ;;  %2383 = vmatprep.subr.mxu1 %v1525_v38 }
 0x2c5   : > { %2387 = vmatprep.mubr.msk.f32.mxu1 %vm244_vm0, %v2873_v42  ;;  %2384 = vmatpush3.msra.mxu1 %v1525_v38 }
 0x2c6   : > { %2385 = vmatprep.subr.mxu1 %v1524_v40 }
 0x2c7   : > { %2386 = vmatpush3.msra.mxu1 %v1524_v40 }
 0x2c8   : > { %2388 = vmatmul.mubr.msk.f32.vlgmr.msra.gmra.mxu1 %vm244_vm0, %v2877_v43 }
 0x2c9   : > { %2401 = vmatprep.mubr.msk.f32.mxu1 %vm244_vm0, %v1677_v59 }
 0x380   : > { %v2361_v41 = vpop.f32.mrf.mxu1 }
 0x381   : > { %v1277_v44 = vadd.f32 %v2361_v41, %v1035_v26 }
 0x382   : > { %v1267_v47 = vpop.f32.mrf.mxu1 }
 0x383   : > { %v1276_v49 = vadd.f32 %v1267_v47, %v1034_v29 }
 0x384   : > { %v2375_v50 = vpop.f32.mrf.mxu1 }
 0x385   : > { %v1431_v51 = vadd.f32 %v2375_v50, %v2368_v48 }
 0x386   : > { %v1425_v53 = vpop.f32.mrf.mxu1 }
 0x387   : > { %v1426_v54 = vadd.f32 %v1425_v53, %v1350_v52  ;;  %2376 = vmatprep.subr.mxu0 %v1431_v51 }
 0x388   : > { %2377 = vmatpush3.msra.mxu0 %v1431_v51  ;;  %v2389_v0 = vpop.f32.mrf.mxu1 }
 0x389   : > { %2378 = vmatprep.subr.mxu0 %v1426_v54 }
 0x38a   : > { %2379 = vmatpush3.msra.mxu0 %v1426_v54 }
 0x38b   : > { %2381 = vmatmul.mubr.msk.f32.vlgmr.msra.gmra.mxu0 %vm244_vm0, %v1436_v55  ;;  %2390 = vmatprep.subr.mxu0 %v1522_v56 }
 0x38c   : > { %2391 = vmatpush3.msra.mxu0 %v1522_v56  ;;  %2394 = vmatprep.mubr.msk.f32.mxu0 %vm244_vm0, %v2883_v45 }
 0x38d   : > { %2392 = vmatprep.subr.mxu0 %v1521_v57 }
 0x38e   : > { %2393 = vmatpush3.msra.mxu0 %v1521_v57 }
 0x38f   : > { %2395 = vmatmul.mubr.msk.f32.vlgmr.msra.gmra.mxu0 %vm244_vm0, %v2887_v46  ;;  %2404 = vmatprep.subr.mxu0 %v1767_v58 }
 0x390   : > { %2408 = vmatprep.mubr.msk.f32.mxu0 %vm244_vm0, %v2873_v42  ;;  %2405 = vmatpush3.msra.mxu0 %v1767_v58  ;;  %v1592_v42 = vpop.f32.mrf.mxu1 }
 0x391   : > { %2406 = vmatprep.subr.mxu0 %v1766_v60 }
 0x392   : > { %2407 = vmatpush3.msra.mxu0 %v1766_v60 }
 0x393   : > { %2409 = vmatmul.mubr.msk.f32.vlgmr.msra.gmra.mxu0 %vm244_vm0, %v2877_v43  ;;  %v1919_v43 = vld [vmem:[#allocation9 + $0x60] sm:$0xff] }
 0x394   : > { %2422 = vmatprep.mubr.msk.f32.mxu0 %vm244_vm0, %v1919_v43 }
 0x44b   : > { %v2382_v61 = vpop.f32.mrf.mxu0 }
 0x44c   : > { %v1519_v62 = vadd.f32 %v2382_v61, %v1277_v44 }
 0x44d   : > { %v1509_v63 = vpop.f32.mrf.mxu0 }
 0x44e   : > { %v1518_v1 = vadd.f32 %v1509_v63, %v1276_v49 }
 0x44f   : > { %v2396_v2 = vpop.f32.mrf.mxu0 }
 0x450   : > { %v1673_v3 = vadd.f32 %v2396_v2, %v2389_v0 }
 0x451   : > { %v1667_v4 = vpop.f32.mrf.mxu0 }
 0x452   : > { %v1668_v5 = vadd.f32 %v1667_v4, %v1592_v42  ;;  %2397 = vmatprep.subr.mxu1 %v1673_v3 }
 0x453   : > { %2398 = vmatpush3.msra.mxu1 %v1673_v3  ;;  %v2410_v12 = vpop.f32.mrf.mxu0 }
 0x454   : > { %2399 = vmatprep.subr.mxu1 %v1668_v5 }
 0x455   : > { %2400 = vmatpush3.msra.mxu1 %v1668_v5  ;;  %v1834_v16 = vpop.f32.mrf.mxu0 }
 0x456   : > { %2402 = vmatmul.mubr.msk.f32.vlgmr.msra.gmra.mxu1 %vm244_vm0, %v1678_v6  ;;  %2411 = vmatprep.subr.mxu1 %v1764_v7 }
 0x457   : > { %2412 = vmatpush3.msra.mxu1 %v1764_v7  ;;  %2415 = vmatprep.mubr.msk.f32.mxu1 %vm244_vm0, %v2883_v45  ;;  %v1920_v45 = vld [vmem:[#allocation9 + $0x68] sm:$0xff] }
 0x458   : > { %2413 = vmatprep.subr.mxu1 %v1763_v8 }
 0x459   : > { %2414 = vmatpush3.msra.mxu1 %v1763_v8 }
 0x45a   : > { %2416 = vmatmul.mubr.msk.f32.vlgmr.msra.gmra.mxu1 %vm244_vm0, %v2887_v46 }
 0x516   : > { %v2403_v9 = vpop.f32.mrf.mxu1 }
 0x517   : > { %v1761_v10 = vadd.f32 %v2403_v9, %v1519_v62 }
 0x518   : > { %v1751_v11 = vpop.f32.mrf.mxu1 }
 0x519   : > { %v1760_v13 = vadd.f32 %v1751_v11, %v1518_v1 }
 0x51a   : > { %v2417_v14 = vpop.f32.mrf.mxu1 }
 0x51b   : > { %v1915_v15 = vadd.f32 %v2417_v14, %v2410_v12 }
 0x51c   : > { %v1909_v17 = vpop.f32.mrf.mxu1 }
 0x51d   : > { %v1910_v18 = vadd.f32 %v1909_v17, %v1834_v16  ;;  %2418 = vmatprep.subr.mxu0 %v1915_v15 }
 0x51e   : > { %2419 = vmatpush3.msra.mxu0 %v1915_v15 }
 0x51f   : > { %2420 = vmatprep.subr.mxu0 %v1910_v18 }
 0x520   : > { %2421 = vmatpush3.msra.mxu0 %v1910_v18 }
 0x521   : > { %2423 = vmatmul.mubr.msk.f32.vlgmr.msra.gmra.mxu0 %vm244_vm0, %v1920_v45 }
 0x5e1   : > { %v2424_v46 = vpop.f32.mrf.mxu0 }
 0x5e2   : > { %v2003_v19 = vadd.f32 %v2424_v46, %v1761_v10 }
 0x5e3   : > { %v1993_v20 = vpop.f32.mrf.mxu0 }
 0x5e4   : > { %v2005_v21 = vmul.f32 0.5, %v2003_v19  ;;  %v2002_v22 = vadd.f32 %v1993_v20, %v1760_v13 }
 0x5e6   : > { %2512 = vtanh.f32 %v2005_v21  ;;  %v2004_v23 = vmul.f32 0.5, %v2002_v22 }
 0x5e8   : > { %2514 = vtanh.f32 %v2004_v23 }
 0x5f3   : > { %v2513_v24 = vpop.eup %2512 }
 0x5f4   : > { %v2009_v25 = vmul.f32 0.5, %v2513_v24 }
 0x5f5   : > { %v2515_v26 = vpop.eup %2514 }
 0x5f6   : > { %v2011_v27 = vadd.f32 0.5, %v2009_v25  ;;  %v2008_v28 = vmul.f32 0.5, %v2515_v26 }
 0x5f8   : > { %2013 = vst.msk [vmem:[%s234_s24 + $0x8] sm:$0xff] %vm244_vm0, %v2011_v27  ;;  %v2010_v29 = vadd.f32 0.5, %v2008_v28 }
 0x5fa   : > { %2012 = vst.msk [vmem:[%s234_s24] sm:$0xff] %vm244_vm0, %v2010_v29 }
 0x5fb   : > { %2609 = shalt.err (!%p2606_p2)
}
 0x5fc   : > { %s2610_s28 = scalar_lea.hbm %s2956_s9, 256  ;;  %s2614_s30 = scalar_lea.hbm %s3011_s3, 512 }
 0x5fd   : > { %p2611_p9 = scmp.ne.s32.totalorder %s2956_s9, %s2610_s28  ;;  %p2615_p0 = scmp.lt.s32.totalorder %s2956_s9, %s3011_s3 }
 0x5fe   : > { %p2616_p7 = scmp.lt.s32.totalorder %s2614_s30, %s2610_s28 }
 0x5ff   : > { %p2612_p12 = pnand %p2611_p9, %p2811_p3 }
 0x600   : > { %p2617_p5 = por %p2616_p7, %p2615_p0 }
 0x601   : > { %p2613_p13 = pneg %p2612_p12 }
 0x603   : > { %p2618_p1 = pnand %p2617_p5, %p2613_p13 }
 0x605   : > { %2621 = shalt.err (!%p2618_p1)
}
 0x606   : > { %s2688_s22 = smov 128   ;;  %s2689_s24 = smov 8  }
 0x607   : > { %2435 = dma.vmem_to_hbm [thread:$0]  (%p2811_p3), %s2958_s5, 256, %s2956_s9, %s2015_s15, %s2688_s22, %s2688_s22, %s2689_s24  }
 0x608 PF: > { %s2043_s7 = sand.u32 1, %s2660_s12   ;;  %p3022_p4 = scmp.ne.s32.totalorder %s3016_s23, 0 }
 0x609   : > { %p3023_p6 = scmp.ge.s32.totalorder %s2680_s17, 2  ;;  %s2044_s8 = scalar_lea.sflag [#allocation6], %s2043_s7 }
 0x60b   : > { %p2449_p8 = pnand %p3023_p6, %p3022_p4 }
 0x60d   : > { %p2450_p10 = pneg %p2449_p8 }
 0x60f   : > { %2655 = dma.done.wait (%p2450_p10), %s2044_s8, 256  }
 0x610   : > { %2657 = vsyncadd (%p2450_p10), %s2044_s8, 4294967040  ;;  %s20_s17 = sadd.s32 1, %s2680_s17   ;;  %s3024_s12 = smov %s2664_s13 }
 0x611   : > { %p17_p11 = scmp.ge.s32.totalorder %s20_s17, 4   ;;  %s3025_s13 = smov %s2668_s14 }
 0x612   : > { %s3026_s14 = smov %s2820_s29  ;;  %s3027_s15 = smov %s2676_s16 }
 0x613   : > { %s3028_s16 = smov %s3030_s11  ;;  %19 = sbr.rel (!%p17_p11) target bundleno = 7 (0x7), region = 116 }
 0x618   :  { %2049 = vsyncpa [#allocation5], 1 }
 0x619   :  { %2051 = vsyncpa [#allocation5 + $0x1], 1 }
 0x61a   :  { %2052 = vsyncpa [#allocation8], 1 }
 0x61b   :  { %2053 = vsyncpa [#allocation6], 1 }
 0x61c   :  { %2055 = vsyncpa [#allocation6 + $0x1], 1 }

</bundles_post_ra>
